<compile_context>
chip_gen: v7x
topology: tpu7x:2x2x1
jax: 0.10.0
libtpu: 0.0.40
codegen_flags: <defaults>
</compile_context>

<pallas_src>
import jax
import jax.numpy as jnp
from jax import lax
from jax.experimental import pallas as pl
from jax.experimental.pallas import tpu as pltpu


def _make_style_kernel(C, t_c, num_strips, hw, t_hw, ragged, inv_scale):
    """Build the kernel for one (batch, row-strip, hw-tile) grid step.

    x_ref / y_ref : (C, t_hw) input tiles (batch dim squeezed).
    out_ref       : (1, 1, 1) per-(batch, strip) partial sum of squared,
                    already-normalized Gram differences.
    gx_ref/gy_ref : (t_c, C) f32 Gram accumulators (VMEM scratch).
    """

    def kernel(x_ref, y_ref, out_ref, gx_ref, gy_ref):
        h = pl.program_id(2)

        @pl.when(h == 0)
        def _zero():
            gx_ref[...] = jnp.zeros_like(gx_ref)
            gy_ref[...] = jnp.zeros_like(gy_ref)

        x_full = x_ref[...]
        y_full = y_ref[...]
        if num_strips == 1:
            x_strip, y_strip = x_full, y_full
        else:
            r = pl.program_id(1)
            row0 = pl.multiple_of(r * t_c, t_c)
            x_strip = x_ref[pl.ds(row0, t_c), :]
            y_strip = y_ref[pl.ds(row0, t_c), :]

        if ragged:
            # Last HW tile extends past the true HW extent; zero the tail lanes
            # (of both operands, so no garbage/NaN reaches the MXU contraction).
            col = lax.broadcasted_iota(jnp.int32, (1, t_hw), 1)
            valid = (col + h * t_hw) < hw
            x_full = jnp.where(valid, x_full, 0).astype(x_full.dtype)
            y_full = jnp.where(valid, y_full, 0).astype(y_full.dtype)
            if num_strips == 1:
                x_strip, y_strip = x_full, y_full
            else:
                x_strip = jnp.where(valid, x_strip, 0).astype(x_strip.dtype)
                y_strip = jnp.where(valid, y_strip, 0).astype(y_strip.dtype)

        # Contract the shared HW axis directly on the MXU (no explicit transpose).
        dims = (((1,), (1,)), ((), ()))
        gx_ref[...] += lax.dot_general(
            x_strip, x_full, dims, preferred_element_type=jnp.float32)
        gy_ref[...] += lax.dot_general(
            y_strip, y_full, dims, preferred_element_type=jnp.float32)

        # NOTE: the (1,1,1) output block is revisited across the HW axis and is
        # only written on the last step; this relies on the standard Pallas
        # accumulator-output (P3) writeback-on-block-change behavior.
        @pl.when(h == pl.num_programs(2) - 1)
        def _final():
            d = (gx_ref[...] - gy_ref[...]) * jnp.float32(inv_scale)
            out_ref[...] = jnp.sum(d * d).reshape(1, 1, 1)

    return kernel


def style_reconstruction_loss(input_features, target_features, *,
                              row_split=None, max_t_hw=None):
    """Pallas equivalent of StyleReconstructionLoss.forward.

    input_features, target_features: (B, C, H, W). Returns a scalar f32 loss.
    row_split: force (True) / disable (False) the Gram row-strip megacore split;
               None = auto (only on v7x-like parts when B == 1).
    max_t_hw:  optional cap on the HW tile size (testing / tuning knob).
    """
    B, C, H, W = input_features.shape
    HW = H * W

    x = jnp.reshape(input_features, (B, C, HW))
    y = jnp.reshape(target_features, (B, C, HW))

    # Keep bf16/f32 as given; force f32 for anything else.
    if x.dtype not in (jnp.dtype(jnp.float32), jnp.dtype(jnp.bfloat16)):
        x = x.astype(jnp.float32)
    y = y.astype(x.dtype)
    itemsize = jnp.dtype(x.dtype).itemsize
    sub_mult = {1: 32, 2: 16, 4: 8}.get(itemsize, 8)   # dtype sublane packing

    # ---- generation-aware VMEM sizing (v5e/v6e: 128 MiB, v7x: 64 MiB / TC) ----
    try:
        vmem_cap = int(pltpu.get_tpu_info().vmem_capacity_bytes)
        info_ok = True
    except Exception:
        vmem_cap = 64 << 20          # conservative fallback
        info_ok = False
    if vmem_cap >= (100 << 20):      # v5e / v6e class parts
        tile_budget, t_hw_cap, vmem_ceiling = 48 << 20, 8192, 96 << 20
    else:                            # v7x-like (64 MiB per TensorCore)
        tile_budget, t_hw_cap, vmem_ceiling = 18 << 20, 4096, 38 << 20

    # ---- optional Gram row-strip split: 2nd "parallel" axis for v7x megacore ----
    want_split = (row_split if row_split is not None
                  else (info_ok and vmem_cap < (100 << 20) and B == 1))
    if want_split and C >= 2 * sub_mult and C % (2 * sub_mult) == 0:
        num_strips, t_c = 2, C // 2
    else:
        num_strips, t_c = 1, C

    # ---- HW tile size: biggest tile that fits the (generation-aware) budget ----
    scratch_bytes = 2 * t_c * C * 4
    budget = max(tile_budget - scratch_bytes, 2 << 20)
    cap = t_hw_cap if max_t_hw is None else max(128, min(t_hw_cap, int(max_t_hw)))
    per_lane = 4 * C * itemsize                    # 2 inputs x 2 pipeline buffers
    t_by_budget = (budget // max(per_lane, 1)) // 128 * 128
    t_hw = max(128, min(t_by_budget, cap))
    if HW <= t_hw:
        t_hw, num_hw_tiles, ragged = HW, 1, False  # single full-extent tile
    else:
        num_hw_tiles = -(-HW // t_hw)
        ragged = (HW % t_hw) != 0                  # mask tail lanes in-kernel

    in_tile_bytes = 4 * C * t_hw * itemsize
    need = in_tile_bytes + scratch_bytes + (1 << 20)
    vmem_limit = int(max(min(need + need // 4, vmem_ceiling), need, 16 << 20))

    inv_scale = 1.0 / float(C * H * W)
    kernel = _make_style_kernel(C, t_c, num_strips, HW, t_hw, ragged, inv_scale)

    partials = pl.pallas_call(
        kernel,
        out_shape=jax.ShapeDtypeStruct((B * num_strips, 1, 1), jnp.float32),
        grid_spec=pltpu.PrefetchScalarGridSpec(
            num_scalar_prefetch=0,
            grid=(B, num_strips, num_hw_tiles),
            in_specs=[
                pl.BlockSpec((None, C, t_hw), lambda b, r, h: (b, 0, h)),
                pl.BlockSpec((None, C, t_hw), lambda b, r, h: (b, 0, h)),
            ],
            out_specs=pl.BlockSpec(
                (1, 1, 1), lambda b, r, h: (b * num_strips + r, 0, 0)),
            scratch_shapes=[
                pltpu.VMEM((t_c, C), jnp.float32),
                pltpu.VMEM((t_c, C), jnp.float32),
            ],
        ),
        compiler_params=pltpu.CompilerParams(
            dimension_semantics=("parallel", "parallel", "arbitrary"),
            vmem_limit_bytes=vmem_limit,
        ),
        cost_estimate=pl.CostEstimate(
            flops=4 * B * C * C * HW,
            transcendentals=0,
            bytes_accessed=2 * B * C * HW * itemsize * num_strips
                           + B * num_strips * 4,
        ),
    )(x, y)

    # Gram scale 1/(C*H*W) already applied in-kernel; apply the MSE mean here.
    return jnp.sum(partials) * (1.0 / float(B * C * C))


def _reference_loss(input_features, target_features):
    B, C, H, W = input_features.shape
    x = input_features.reshape(B, C, -1).astype(jnp.float32)
    y = target_features.reshape(B, C, -1).astype(jnp.float32)
    hi = lax.Precision.HIGHEST
    gx = jnp.einsum("bck,bdk->bcd", x, x, precision=hi) / (C * H * W)
    gy = jnp.einsum("bck,bdk->bcd", y, y, precision=hi) / (C * H * W)
    return jnp.mean((gx - gy) ** 2)


if __name__ == "__main__":
    key = jax.random.PRNGKey(0)
    ks = jax.random.split(key, 6)

    # 1) Default path at the module's nominal small shapes (single full HW tile).
    x1 = jax.random.normal(ks[0], (2, 4, 16, 16), dtype=jnp.float32)
    y1 = jax.random.normal(ks[1], (2, 4, 16, 16), dtype=jnp.float32)
    out1 = jax.block_until_ready(style_reconstruction_loss(x1, y1))
    ref1 = jax.block_until_ready(_reference_loss(x1, y1))
    assert jnp.allclose(out1, ref1, rtol=1e-4, atol=1e-8), (out1, ref1)

    # 2) Ragged HW tiling (forced small tile so the in-kernel lane mask runs).
    x2 = jax.random.normal(ks[2], (2, 8, 20, 20), dtype=jnp.float32)
    y2 = jax.random.normal(ks[3], (2, 8, 20, 20), dtype=jnp.float32)
    out2 = jax.block_until_ready(style_reconstruction_loss(x2, y2, max_t_hw=128))
    ref2 = jax.block_until_ready(_reference_loss(x2, y2))
    assert jnp.allclose(out2, ref2, rtol=1e-4, atol=1e-8), (out2, ref2)

    # 3) Gram row-strip split (v7x megacore path) + ragged tiles, B = 1.
    x3 = jax.random.normal(ks[4], (1, 16, 20, 20), dtype=jnp.float32)
    y3 = jax.random.normal(ks[5], (1, 16, 20, 20), dtype=jnp.float32)
    out3 = jax.block_until_ready(
        style_reconstruction_loss(x3, y3, row_split=True, max_t_hw=128))
    ref3 = jax.block_until_ready(_reference_loss(x3, y3))
    assert jnp.allclose(out3, ref3, rtol=1e-4, atol=1e-8), (out3, ref3)

    print("KERNEL_OK")
</pallas_src>

<mosaic_0001>
module attributes {stable_mosaic.version = 11 : i64} {
  func.func @kernel(%arg0: i32, %arg1: i32, %arg2: i32, %arg3: memref<1x4x256xf32, #tpu.memory_space<vmem>>, %arg4: memref<1x4x256xf32, #tpu.memory_space<vmem>>, %arg5: memref<1x1x1xf32, #tpu.memory_space<vmem>>, %arg6: memref<4x4xf32, #tpu.memory_space<vmem>>, %arg7: memref<4x4xf32, #tpu.memory_space<vmem>>) attributes {dimension_semantics = [#tpu.dimension_semantics<parallel>, #tpu.dimension_semantics<parallel>, #tpu.dimension_semantics<arbitrary>], iteration_bounds = array<i64: 2, 1, 1>, scalar_prefetch = 0 : i64, scratch_operands = 2 : i64, tpu.core_type = #tpu.core_type<tc>, window_params = [{transform_indices = @transform_0, window_bounds = array<i64: 1, 4, 256>}, {transform_indices = @transform_1, window_bounds = array<i64: 1, 4, 256>}, {transform_indices = @transform_2, window_bounds = array<i64: 1, 1, 1>}]} {
    %c0_i32 = arith.constant 0 : i32
    %0 = arith.cmpi eq, %arg2, %c0_i32 : i32
    %1 = arith.extui %0 : i1 to i32
    %c0_i32_0 = arith.constant 0 : i32
    %2 = arith.cmpi ne, %1, %c0_i32_0 : i32
    scf.if %2 {
      %cst_17 = arith.constant 0.000000e+00 : f32
      %18 = vector.broadcast %cst_17 : f32 to vector<4x4xf32>
      %c0_18 = arith.constant 0 : index
      %c0_19 = arith.constant 0 : index
      %19 = vector.load %arg6[%c0_18, %c0_19] : memref<4x4xf32, #tpu.memory_space<vmem>>, vector<4x4xf32>
      tpu.vector_store %arg6[%c0_18, %c0_19], %18 {strides = array<i32>} : memref<4x4xf32, #tpu.memory_space<vmem>>, vector<4x4xf32>,
      %cst_20 = arith.constant 0.000000e+00 : f32
      %20 = vector.broadcast %cst_20 : f32 to vector<4x4xf32>
      %c0_21 = arith.constant 0 : index
      %c0_22 = arith.constant 0 : index
      %21 = vector.load %arg7[%c0_21, %c0_22] : memref<4x4xf32, #tpu.memory_space<vmem>>, vector<4x4xf32>
      tpu.vector_store %arg7[%c0_21, %c0_22], %20 {strides = array<i32>} : memref<4x4xf32, #tpu.memory_space<vmem>>, vector<4x4xf32>,
    } else {
    }
    %c0 = arith.constant 0 : index
    %c0_1 = arith.constant 0 : index
    %c0_2 = arith.constant 0 : index
    %3 = vector.load %arg3[%c0, %c0_1, %c0_2] : memref<1x4x256xf32, #tpu.memory_space<vmem>>, vector<1x4x256xf32>
    %4 = vector.shape_cast %3 : vector<1x4x256xf32> to vector<4x256xf32>
    %c0_3 = arith.constant 0 : index
    %c0_4 = arith.constant 0 : index
    %c0_5 = arith.constant 0 : index
    %5 = vector.load %arg4[%c0_3, %c0_4, %c0_5] : memref<1x4x256xf32, #tpu.memory_space<vmem>>, vector<1x4x256xf32>
    %6 = vector.shape_cast %5 : vector<1x4x256xf32> to vector<4x256xf32>
    %c0_6 = arith.constant 0 : index
    %c0_7 = arith.constant 0 : index
    %7 = vector.load %arg6[%c0_6, %c0_7] : memref<4x4xf32, #tpu.memory_space<vmem>>, vector<4x4xf32>
    %cst = arith.constant dense<0.000000e+00> : vector<4x4xf32>
    %8 = tpu.matmul %4, %4, %cst {dimension_numbers = #tpu.dot_dimension_numbers<[1], [1], [0], [0], [0, 0, 1, 0], [], []>} : vector<4x256xf32>, vector<4x256xf32>, vector<4x4xf32> -> vector<4x4xf32>
    %9 = arith.addf %7, %8 : vector<4x4xf32>
    %c0_8 = arith.constant 0 : index
    %c0_9 = arith.constant 0 : index
    %10 = vector.load %arg6[%c0_8, %c0_9] : memref<4x4xf32, #tpu.memory_space<vmem>>, vector<4x4xf32>
    tpu.vector_store %arg6[%c0_8, %c0_9], %9 {strides = array<i32>} : memref<4x4xf32, #tpu.memory_space<vmem>>, vector<4x4xf32>,
    %c0_10 = arith.constant 0 : index
    %c0_11 = arith.constant 0 : index
    %11 = vector.load %arg7[%c0_10, %c0_11] : memref<4x4xf32, #tpu.memory_space<vmem>>, vector<4x4xf32>
    %cst_12 = arith.constant dense<0.000000e+00> : vector<4x4xf32>
    %12 = tpu.matmul %6, %6, %cst_12 {dimension_numbers = #tpu.dot_dimension_numbers<[1], [1], [0], [0], [0, 0, 1, 0], [], []>} : vector<4x256xf32>, vector<4x256xf32>, vector<4x4xf32> -> vector<4x4xf32>
    %13 = arith.addf %11, %12 : vector<4x4xf32>
    %c0_13 = arith.constant 0 : index
    %c0_14 = arith.constant 0 : index
    %14 = vector.load %arg7[%c0_13, %c0_14] : memref<4x4xf32, #tpu.memory_space<vmem>>, vector<4x4xf32>
    tpu.vector_store %arg7[%c0_13, %c0_14], %13 {strides = array<i32>} : memref<4x4xf32, #tpu.memory_space<vmem>>, vector<4x4xf32>,
    %c0_i32_15 = arith.constant 0 : i32
    %15 = arith.cmpi eq, %arg2, %c0_i32_15 : i32
    %16 = arith.extui %15 : i1 to i32
    %c0_i32_16 = arith.constant 0 : i32
    %17 = arith.cmpi ne, %16, %c0_i32_16 : i32
    scf.if %17 {
      %c0_17 = arith.constant 0 : index
      %c0_18 = arith.constant 0 : index
      %18 = vector.load %arg6[%c0_17, %c0_18] : memref<4x4xf32, #tpu.memory_space<vmem>>, vector<4x4xf32>
      %c0_19 = arith.constant 0 : index
      %c0_20 = arith.constant 0 : index
      %19 = vector.load %arg7[%c0_19, %c0_20] : memref<4x4xf32, #tpu.memory_space<vmem>>, vector<4x4xf32>
      %20 = arith.subf %18, %19 : vector<4x4xf32>
      %cst_21 = arith.constant 9.765625E-4 : f32
      %21 = vector.broadcast %cst_21 : f32 to vector<4x4xf32>
      %22 = arith.mulf %20, %21 : vector<4x4xf32>
      %23 = arith.mulf %22, %22 : vector<4x4xf32>
      %24 = vector.shape_cast %23 : vector<4x4xf32> to vector<1x4x4xf32>
      %cst_22 = arith.constant dense<0.000000e+00> : vector<1xf32>
      %25 = vector.multi_reduction <add>, %24, %cst_22 [1, 2] : vector<1x4x4xf32> to vector<1xf32>
      %26 = vector.shape_cast %25 : vector<1xf32> to vector<1x1x1xf32>
      %27 = vector.extract %26[0, 0, 0] : f32 from vector<1x1x1xf32>
      %28 = vector.broadcast %27 : f32 to vector<1x1x1xf32>
      %c0_23 = arith.constant 0 : index
      %c0_24 = arith.constant 0 : index
      %c0_25 = arith.constant 0 : index
      %29 = vector.load %arg5[%c0_23, %c0_24, %c0_25] : memref<1x1x1xf32, #tpu.memory_space<vmem>>, vector<1x1x1xf32>
      tpu.vector_store %arg5[%c0_23, %c0_24, %c0_25], %28 {strides = array<i32>} : memref<1x1x1xf32, #tpu.memory_space<vmem>>, vector<1x1x1xf32>,
    } else {
    }
    return
  }
  func.func @transform_0(%arg0: i32, %arg1: i32, %arg2: i32) -> (i32, i32, i32) {
    %c0_i32 = arith.constant 0 : i32
    %c0_i32_0 = arith.constant 0 : i32
    return %arg0, %c0_i32, %arg2 : i32, i32, i32
  }
  func.func @transform_1(%arg0: i32, %arg1: i32, %arg2: i32) -> (i32, i32, i32) {
    %c0_i32 = arith.constant 0 : i32
    %c0_i32_0 = arith.constant 0 : i32
    return %arg0, %c0_i32, %arg2 : i32, i32, i32
  }
  func.func @transform_2(%arg0: i32, %arg1: i32, %arg2: i32) -> (i32, i32, i32) {
    %c1_i32 = arith.constant 1 : i32
    %0 = arith.muli %arg0, %c1_i32 : i32
    %1 = arith.addi %0, %arg1 : i32
    %c0_i32 = arith.constant 0 : i32
    %c0_i32_0 = arith.constant 0 : i32
    %c0_i32_1 = arith.constant 0 : i32
    return %1, %c0_i32, %c0_i32_0 : i32, i32, i32
  }
}

</mosaic_0001>

<bundles_post_ra>
// kernel: tpu_custom_call.1
= control target key start
LH: loop header
LB: loop body
LE: loop exit
PB: predicated region body
PF: predicated region fallthrough
CT: control target
= control target key end

     0   :  { %7 = vsyncpa [#allocation5], 0  ;;  %s908_s0 = inlined_call_operand.hbm [shape: f32[2,4,256], index: 0, kind: input, shape index: {}]   ;;  %s909_s1 = inlined_call_operand.hbm [shape: f32[2,4,256], index: 1, kind: input, shape index: {}]   ;;  %s910_s2 = inlined_call_operand.vmem [shape: f32[2,1,1], index: 2, kind: output, shape index: {}]  }
   0x1   :  { %9 = vsyncpa [#allocation5 + $0x1], 0 }
   0x2   :  { %10 = vsyncpa [#allocation7], 0 }
   0x3   :  { %12 = vsyncpa [#allocation7 + $0x1], 0  ;;  %s731_s9 = smov 0   ;;  %s733_s10 = smov 0  }
   0x4   :  { %s735_s11 = smov 0   ;;  %s737_s12 = smov 0  }
   0x5   :  { %s739_s13 = smov 0   ;;  %s741_s14 = smov 0  }
   0x6 LB: > { %s515_s15 = sadd.s32 4294967295, %s711_s14   ;;  %s37_s16 = sadd.s32 1, %s707_s13  ;;  %s711_s14 = sphi %s741_s14, %s18_s14   ;;  %s707_s13 = sphi %s739_s13, %s924_s13   ;;  %s703_s12 = sphi %s737_s12, %s923_s12   ;;  %s699_s11 = sphi %s735_s11, %s922_s11   ;;  %s695_s10 = sphi %s733_s10, %s921_s10   ;;  %s691_s9 = sphi %s731_s9, %s920_s9  }
   0x7   : > { %p39_p0 = scmp.ge.s32.totalorder %s37_s16, 2  ;;  %s46_s17 = sadd.s32 1, %s699_s11 }
   0x8   : > { %p53_p1 = scmp.ne.s32.totalorder %s699_s11, %s695_s10  ;;  %p54_p2 = scmp.eq.s32.totalorder %s711_s14, 0 }
   0x9   : > { %s926_s16 = smov (%p39_p0, %s37_s16), 0  ;;  %p59_p4 = scmp.ne.s32.totalorder %s695_s10, %s691_s9 }
   0xa   : > { %p767_p3 = por %p54_p2, %p53_p1  ;;  %s41_s19 = ssub.s32 %s707_s13, %s926_s16 }
   0xb   : > { %p60_p5 = scmp.eq.s32.totalorder %s515_s15, 0  ;;  %p44_p6 = scmp.eq.s32.totalorder %s41_s19, 0 }
   0xc   : > { %p545_p8 = scmp.lt.s32.totalorder %s711_s14, 2  ;;  %s783_s22 = sand.u32 1, %s699_s11  }
   0xd   : > { %p774_p7 = por %p60_p5, %p59_p4  ;;  %s530_s23 = sshll.u32 %s707_s13, 7 }
   0xe   : > { %s780_s21 = scalar_select %p44_p6, %s699_s11, %s46_s17  }
   0xf   : > { %s913_s20 = scalar_select %p774_p7, 1, 0 }
  0x10   : > { %s519_s24 = sshll.u32 %s783_s22, 3  ;;  %s792_s27 = scalar_lea.hbm %s908_s0, %s530_s23 }
  0x11   : > { %s143_s28 = scalar_lea.vmem [#allocation4], %s519_s24  ;;  %p798_p9 = pnand %p545_p8, %p767_p3 }
  0x12   : > { %s153_s29 = sshll.u32 %s143_s28, 4  ;;  %s140_s3 = scalar_lea.sflag [#allocation5], %s783_s22  ;;  %s802_s29 = int_to_ptr.vmem [resolvable:$true] %s153_s29 }
  0x13   : > { %s597_s4 = scalar_lea.hbm %s792_s27, 128  ;;  %p599_p13 = pneg %p798_p9 }
  0x14   : > { %p598_p12 = scmp.ne.s32.totalorder %s792_s27, %s597_s4  ;;  %s602_s7 = scalar_lea.hbm %s908_s0, 256 }
  0x15   : > { %p603_p2 = scmp.lt.u32.totalorder %s792_s27, %s908_s0  ;;  %p604_p3 = scmp.lt.u32.totalorder %s602_s7, %s597_s4 }
  0x16   : > { %p600_p0 = pnand %p599_p13, %p598_p12  ;;  %p606_p5 = scmp.lt.u32.totalorder %s597_s4, %s792_s27 }
  0x17   : > { %p605_p4 = por %p604_p3, %p603_p2 }
  0x18   : > { %p601_p1 = pneg %p600_p0 }
  0x19   : > { %p607_p6 = por %p606_p5, %p605_p4 }
  0x1b   : > { %p608_p8 = pnand %p607_p6, %p601_p1 }
  0x1d   : > { %611 = shalt.err (!%p608_p8)
}
  0x1e   : > { %s612_s15 = scalar_lea.vmem %s802_s29, 128  ;;  %s713_s17 = smov [#allocation4]  }
  0x1f   : > { %p613_p12 = scmp.ne.s32.totalorder %s802_s29, %s612_s15  ;;  %s617_s18 = sshll.u32 %s713_s17, 4  ;;  %s618_s18 = int_to_ptr.vmem [resolvable:$false] %s617_s18 }
  0x20   : > { %s619_s19 = scalar_lea.vmem %s618_s18, 256  ;;  %p620_p11 = scmp.lt.s32.totalorder %s802_s29, %s618_s18 }
  0x21   : > { %p615_p0 = pnand %p613_p12, %p599_p13  ;;  %p621_p2 = scmp.lt.s32.totalorder %s619_s19, %s612_s15 }
  0x23   : > { %p616_p10 = pneg %p615_p0  ;;  %p622_p3 = por %p621_p2, %p620_p11 }
  0x25   : > { %p623_p4 = pnand %p622_p3, %p616_p10 }
  0x27   : > { %626 = shalt.err (!%p623_p4)
}
  0x28   : > { %541 = dma.hbm_to_vmem [thread:$0]  (!%p798_p9), %s792_s27, 128, %s802_s29, %s140_s3  }
  0x29   : > { %p915_p1 = scmp.lt.s32.totalorder %s711_s14, 3  ;;  %p916_p5 = scmp.ge.s32.totalorder %s711_s14, 1 }
  0x2a   : > { %s845_s4 = scalar_lea.hbm %s909_s1, %s530_s23  ;;  %s164_s5 = scalar_lea.vmem [#allocation6], %s519_s24 }
  0x2b   : > { %p836_p6 = pnand %p916_p5, %p915_p1  ;;  %s174_s6 = sshll.u32 %s164_s5, 4  ;;  %s175_s6 = int_to_ptr.vmem [resolvable:$true] %s174_s6 }
  0x2c   : > { %s161_s27 = scalar_lea.sflag [#allocation7], %s783_s22  ;;  %s627_s29 = scalar_lea.hbm %s845_s4, 128 }
  0x2d   : > { %s917_s25 = scalar_select %p836_p6, 1, 0 }
  0x2e   : > { %p628_p10 = scmp.ne.s32.totalorder %s845_s4, %s627_s29  ;;  %s632_s23 = scalar_lea.hbm %s909_s1, 256 }
  0x2f   : > { %p633_p12 = scmp.lt.u32.totalorder %s845_s4, %s909_s1  ;;  %p634_p0 = scmp.lt.u32.totalorder %s632_s23, %s627_s29 }
  0x30   : > { %p630_p11 = pnand %p628_p10, %p599_p13  ;;  %p636_p3 = scmp.lt.u32.totalorder %s627_s29, %s845_s4 }
  0x31   : > { %p635_p2 = por %p634_p0, %p633_p12 }
  0x32   : > { %p631_p8 = pneg %p630_p11 }
  0x33   : > { %p637_p4 = por %p636_p3, %p635_p2 }
  0x35   : > { %p638_p1 = pnand %p637_p4, %p631_p8 }
  0x37   : > { %641 = shalt.err (!%p638_p1)
}
  0x38   : > { %s642_s22 = scalar_lea.vmem %s175_s6, 128  ;;  %s714_s24 = smov [#allocation6]  }
  0x39   : > { %p643_p5 = scmp.ne.s32.totalorder %s175_s6, %s642_s22  ;;  %s647_s15 = sshll.u32 %s714_s24, 4  ;;  %s648_s15 = int_to_ptr.vmem [resolvable:$false] %s647_s15 }
  0x3a   : > { %s649_s17 = scalar_lea.vmem %s648_s15, 256  ;;  %p650_p7 = scmp.lt.s32.totalorder %s175_s6, %s648_s15 }
  0x3b   : > { %p645_p10 = pnand %p643_p5, %p599_p13  ;;  %p651_p6 = scmp.lt.s32.totalorder %s649_s17, %s642_s22 }
  0x3d   : > { %p646_p11 = pneg %p645_p10  ;;  %p652_p0 = por %p651_p6, %p650_p7 }
  0x3f   : > { %p653_p12 = pnand %p652_p0, %p646_p11 }
  0x41   : > { %656 = shalt.err (!%p653_p12)
}
  0x42   : > { %544 = dma.hbm_to_vmem [thread:$0]  (!%p798_p9), %s845_s4, 128, %s175_s6, %s161_s27  }
  0x43   : > { %p918_p8 = scmp.ne.s32.totalorder %s917_s25, 0 }
  0x44   : > { %s185_s18 = sand.u32 (!%p918_p8), 1, %s695_s10   ;;  %p919_p13 = scmp.ne.s32.totalorder (!%p918_p8), %s913_s20, 0 }
  0x45   : > { %183 = sbr.rel (%p918_p8) target bundleno = 521 (0x209), region = 28  ;;  %s526_s19 = sshll.u32 (!%p918_p8), %s185_s18, 3 }
  0x46   : > { %s186_s26 = scalar_lea.sflag (!%p918_p8), [#allocation5], %s185_s18  ;;  %s189_s28 = scalar_lea.vmem (!%p918_p8), [#allocation4], %s526_s19 }
  0x4c   : > { %682 = dma.done.wait (%p919_p13), %s186_s26, 128  }
  0x4d   : > { %684 = vsyncadd (%p919_p13), %s186_s26, 4294967168  ;;  %s195_s5 = scalar_lea.sflag [#allocation7], %s185_s18  ;;  %s198_s29 = scalar_lea.vmem [#allocation6], %s526_s19 }
  0x4e   : > { %686 = dma.done.wait (%p919_p13), %s195_s5, 128  }
  0x4f   : > { %688 = vsyncadd (%p919_p13), %s195_s5, 4294967168  ;;  %vm234_vm0 = vcmask 27648   ;;  %v715_v0 = vmov 0.0   ;;  %v237_v1 = vld [vmem:[%s189_s28] sm:$0xff]  ;;  %v238_v2 = vld [vmem:[%s198_s29] sm:$0xff]  ;;  %p226_p7 = scmp.lt.s32.totalorder %s703_s12, 1 }
  0x50   : > { %235 = vst.msk [vmem:[#allocation2] sm:$0xf] %vm234_vm0, %v715_v0  ;;  %236 = vst.msk [vmem:[#allocation3] sm:$0xf] %vm234_vm0, %v715_v0  ;;  %v241_v3 = vcombine.high %v237_v1, %v237_v1  ;;  %v318_v4 = vcombine.high %v238_v2, %v238_v2  ;;  %vm411_vm1 = vcmask 0  }
  0x51   : > { %s928_s12 = smov (!%p226_p7, %s703_s12), 1 }
  0x52   : > { %243 = vmatprep.subr.mxu0 %v241_v3  ;;  %320 = vmatprep.subr.mxu1 %v318_v4  ;;  %s228_s25 = scalar_lea.vmem %s910_s2, %s928_s12 }
  0x53   : > { %244 = vmatpush1.xpose.msra.mxu0 %v237_v1  ;;  %321 = vmatpush1.xpose.msra.mxu1 %v238_v2 }
  0x54   : > { %307 = vmatprep.mubr.f32.mxu0 %v241_v3  ;;  %384 = vmatprep.mubr.f32.mxu1 %v318_v4 }
  0x56   : > { %308 = vmatmul.mubr.f32.vlgmr.msra.gmra.mrb[0].mxu0 %v237_v1  ;;  %385 = vmatmul.mubr.f32.vlgmr.msra.gmra.mrb[0].mxu1 %v238_v2 }
  0x57   : > { %v239_v5 = vld [vmem:[#allocation2] sm:$0xf]  ;;  %v316_v6 = vld [vmem:[#allocation3] sm:$0xf] }
 0x129   : > { %v309_v7 = vpop.f32.mrb[0].mxu0  ;;  %v386_v8 = vpop.f32.mrb[0].mxu1 }
 0x12a   : > { %v313_v9 = vadd.f32 %v309_v7, %v239_v5  ;;  %v390_v10 = vadd.f32 %v386_v8, %v316_v6  ;;  %v311_v11 = vpop.f32.mrb[1].mxu0  ;;  %v388_v12 = vpop.f32.mrb[1].mxu1 }
 0x12c   : > { %315 = vst.msk [vmem:[#allocation2] sm:$0xf] %vm234_vm0, %v313_v9  ;;  %391 = vst.msk [vmem:[#allocation3] sm:$0xf] %vm234_vm0, %v390_v10 }
 0x133   : > { %v395_v13 = vld [vmem:[#allocation2] sm:$0xf]  ;;  %v396_v14 = vld [vmem:[#allocation3] sm:$0xf] }
 0x134   : > { %v397_v15 = vsub.f32 %v395_v13, %v396_v14 }
 0x136   : > { %v398_v16 = vmul.f32 0.0009765625, %v397_v15 }
 0x138   : > { %v399_v17 = vmul.f32 %v398_v16, %v398_v16 }
 0x13a   : > { %v400_v18 = vsel %vm234_vm0, %v399_v17, 0.0 }
 0x13b   : > { %401 = vadd.xlane.f32.xlu0 %v400_v18 }
 0x1c8   : > { %v402_v19 = vpop.xlane.xlu0 %401 }
 0x1c9   : > { %v403_v20 = vrot.slane %v402_v19, 4 }
 0x1cb   : > { %v404_v21 = vadd.f32 %v403_v20, %v402_v19 }
 0x1cd   : > { %v405_v22 = vrot.slane %v404_v21, 2 }
 0x1cf   : > { %v406_v23 = vadd.f32 %v405_v22, %v404_v21 }
 0x1d1   : > { %v407_v24 = vrot.slane %v406_v23, 1 }
 0x1d3   : > { %v408_v25 = vadd.f32 %v407_v24, %v406_v23 }
 0x1d5   : > { %532 = vpush %v408_v25 }
 0x206   : > { %s533_s4 = spop %532 }
 0x207   : > { %v410_v26 = vstv %s533_s4 }
 0x208   : > { %412 = vst.msk [vmem:[%s228_s25] sm:$0x1] %vm411_vm1, %v410_v26 }
 0x209 PF: > { %s18_s14 = sadd.s32 1, %s711_s14   ;;  %s920_s9 = smov %s695_s10 }
 0x20a   : > { %p15_p9 = scmp.ge.s32.totalorder %s18_s14, 4   ;;  %s921_s10 = smov %s699_s11 }
 0x20b   : > { %s922_s11 = smov %s780_s21  ;;  %s923_s12 = smov %s707_s13 }
 0x20c   : > { %s924_s13 = smov %s926_s16  ;;  %17 = sbr.rel (!%p15_p9) target bundleno = 6 (0x6), region = 89 }
 0x213   :  { %433 = vsyncpa [#allocation5], 1 }
 0x214   :  { %435 = vsyncpa [#allocation5 + $0x1], 1 }
 0x215   :  { %436 = vsyncpa [#allocation7], 1 }
 0x216   :  { %438 = vsyncpa [#allocation7 + $0x1], 1 }

</bundles_post_ra>
